<compile_context>
chip_gen: v6e
topology: v6e:2x2x1
jax: 0.10.0
libtpu: 0.0.40
codegen_flags: <defaults>
</compile_context>

<pallas_src>
import functools

import jax
import jax.numpy as jnp
from jax.experimental import pallas as pl
from jax.experimental.pallas import tpu as pltpu


def _tpu_vmem_and_cores():
    """Generation-aware (vmem_capacity_bytes, tensorcores_per_chip)."""
    vmem_cap = None
    try:
        vmem_cap = int(pltpu.get_tpu_info().vmem_capacity_bytes)
    except Exception:
        vmem_cap = None
    kind = ""
    try:
        kind = jax.devices()[0].device_kind.lower()
    except Exception:
        kind = ""
    if vmem_cap is None:
        # v7x: 64 MiB VMEM per TensorCore; v5e/v6e: 128 MiB.
        vmem_cap = (64 << 20) if "v7" in kind else (128 << 20)
    vmem_cap = int(min(max(vmem_cap, 32 << 20), 128 << 20))
    num_cores = 2 if "v7" in kind else 1
    return vmem_cap, num_cores


def _choose_block_rows(batch, feat, itemsize, budget_bytes,
                       target_step_bytes=4 << 20, max_rows=8192):
    """Pick a batch-tile size.

    Target ~4 MiB of streamed embedding data per grid step (2 inputs x rows x
    D x itemsize) so the DMA pipeline sits near HBM roofline, while keeping
    2 inputs x 2 pipeline buffers within the generation-aware VMEM budget.
    Rows are aligned to the dtype packing factor (sub-32-bit dtypes pack
    along sublanes)."""
    align = max(8, 32 // max(1, itemsize))          # 8 f32 / 16 bf16 / 32 int8
    rows = target_step_bytes // max(1, 2 * feat * itemsize)
    rows = min(rows, budget_bytes // max(1, 4 * feat * itemsize))
    rows = min(rows, max_rows)
    if rows >= batch:
        return int(batch)                           # block == full dim, always legal
    rows = max(align, (rows // align) * align)
    # TODO(synk): for extremely wide D where even `align` rows overshoot the
    # VMEM budget, add a D-axis "arbitrary" grid dim with a (rows,1) partial-d2
    # accumulator instead of relying on this row floor.
    return int(rows)


def _acce_kernel(o1_ref, o2_ref, t_ref, c_ref, out_ref, acc_ref, *,
                 batch, block_rows, tiles_per_core, num_full_tiles):
    core = pl.program_id(0)
    inner = pl.program_id(1)
    g = core * tiles_per_core + inner               # global tile index

    @pl.when(inner == 0)
    def _():
        acc_ref[...] = jnp.zeros_like(acc_ref)

    # Cast the streamed tile in VMEM (inputs may be bf16); VPU work hidden
    # under the DMA of the next tile.
    o1 = o1_ref[...].astype(jnp.float32)
    o2 = o2_ref[...].astype(jnp.float32)

    diff = o1 - o2 + 1e-6                                   # pairwise_distance eps
    d2 = jnp.sum(diff * diff, axis=-1, keepdims=True)       # (rows, 1) == dist**2

    p = jnp.exp(-d2)                                        # "sigmoid" similarity
    t = t_ref[...].astype(jnp.float32)                      # (rows, 1)
    c = c_ref[...].astype(jnp.float32)                      # (rows, 1)

    # log(p) == -d2 exactly; both log terms clamped at -100 like torch BCE.
    log_p = jnp.maximum(-d2, -100.0)
    log_1mp = jnp.maximum(jnp.log(1.0 - p), -100.0)
    bce = -(t * log_p + (1.0 - t) * log_1mp)                # (rows, 1)

    hi = (c >= 1.0).astype(jnp.float32)
    bce_hi = bce * hi

    def _accum(sum_hi, sum_all, n_hi, n_all):
        # Pack 4 partials into one lane-dense (8,128) accumulator
        # (sublanes 0..3 carry the values, broadcast across 128 lanes).
        sub = jax.lax.broadcasted_iota(jnp.int32, (8, 128), 0)
        vals = jnp.where(sub == 0, sum_hi,
               jnp.where(sub == 1, sum_all,
               jnp.where(sub == 2, n_hi,
               jnp.where(sub == 3, n_all, 0.0))))
        acc_ref[...] += vals

    # Full tiles: no ragged masking, n_all is a compile-time constant.
    @pl.when(g < num_full_tiles)
    def _():
        _accum(jnp.sum(bce_hi), jnp.sum(bce), jnp.sum(hi),
               jnp.float32(block_rows))

    # Ragged last tile and padded (beyond-batch) tiles: mask invalid rows.
    @pl.when(g >= num_full_tiles)
    def _():
        row_idx = g * block_rows + jax.lax.broadcasted_iota(
            jnp.int32, (block_rows, 1), 0)
        valid = (row_idx < batch).astype(jnp.float32)
        _accum(jnp.sum(bce_hi * valid), jnp.sum(bce * valid),
               jnp.sum(hi * valid), jnp.sum(valid))

    @pl.when(inner == pl.num_programs(1) - 1)
    def _():
        out_ref[0] = acc_ref[...]


def approximated_contrastive_ce_loss(output1, output2, target, confidence, *,
                                     max_rows=8192):
    """Returns the scalar loss (float32). Embeddings kept in native dtype."""
    B, D = output1.shape
    t = target.astype(jnp.float32).reshape(B, 1)
    c = confidence.astype(jnp.float32).reshape(B, 1)

    itemsize = jnp.dtype(output1.dtype).itemsize
    vmem_cap, num_cores = _tpu_vmem_and_cores()

    # ~22 MiB streamed-buffer budget on v7x, ~44 MiB on v5e/v6e.
    budget_bytes = int(vmem_cap * 0.35)
    block_rows = _choose_block_rows(B, D, itemsize, budget_bytes,
                                    max_rows=max_rows)

    num_tiles = pl.cdiv(B, block_rows)
    num_full_tiles = B // block_rows
    num_cores = max(1, min(num_cores, num_tiles))
    tiles_per_core = pl.cdiv(num_tiles, num_cores)

    # VMEM needs: 2 inputs x 2 pipeline buffers (native dtype) + f32 working
    # copies + small t/c/out/scratch buffers + headroom.
    stream_bytes = 4 * block_rows * D * itemsize
    f32_work = 2 * block_rows * D * 4
    small_bytes = 4 * block_rows * 4 * 2 + 3 * 8 * 128 * 4
    needed = stream_bytes + f32_work + small_bytes + (8 << 20)
    vmem_limit = int(min(max(needed, 32 << 20), int(vmem_cap * 0.75)))

    def emb_map(ci, ti):
        # Clamp padded tiles (beyond num_tiles) to the last real tile; their
        # contribution is masked to zero inside the kernel.
        g = jnp.minimum(ci * tiles_per_core + ti, num_tiles - 1)
        return (g, 0)

    grid_spec = pltpu.PrefetchScalarGridSpec(
        num_scalar_prefetch=0,
        grid=(num_cores, tiles_per_core),
        in_specs=[
            pl.BlockSpec((block_rows, D), emb_map),
            pl.BlockSpec((block_rows, D), emb_map),
            pl.BlockSpec((block_rows, 1), emb_map),
            pl.BlockSpec((block_rows, 1), emb_map),
        ],
        out_specs=pl.BlockSpec((1, 8, 128), lambda ci, ti: (ci, 0, 0)),
        scratch_shapes=[pltpu.VMEM((8, 128), jnp.float32)],
    )

    partials = pl.pallas_call(
        functools.partial(_acce_kernel,
                          batch=B,
                          block_rows=block_rows,
                          tiles_per_core=tiles_per_core,
                          num_full_tiles=num_full_tiles),
        out_shape=jax.ShapeDtypeStruct((num_cores, 8, 128), jnp.float32),
        grid_spec=grid_spec,
        compiler_params=pltpu.CompilerParams(
            dimension_semantics=("parallel", "arbitrary"),
            vmem_limit_bytes=vmem_limit,
        ),
    )(output1, output2, t, c)

    # Finalize: tiny (num_cores x 4) reduction in the wrapper.
    sums = jnp.sum(partials, axis=0)[:, 0]          # (8,)
    sum_hi, sum_all, n_hi, n_all = sums[0], sums[1], sums[2], sums[3]
    sum_lo = sum_all - sum_hi
    n_lo = n_all - n_hi
    hi_loss = jnp.where(n_hi > 0.0, sum_hi / jnp.maximum(n_hi, 1.0), 0.0)
    lo_loss = jnp.where(n_lo > 0.0, sum_lo / jnp.maximum(n_lo, 1.0), 0.0)
    return 0.1 * hi_loss + lo_loss


def _reference_loss(output1, output2, target, confidence):
    """Pure-JAX reference (log(exp(-d2)) written exactly as -d2)."""
    t = target.astype(jnp.float32)
    c = confidence.astype(jnp.float32)
    diff = output1.astype(jnp.float32) - output2.astype(jnp.float32) + 1e-6
    d2 = jnp.sum(diff * diff, axis=-1)
    p = jnp.exp(-d2)
    log_p = jnp.maximum(-d2, -100.0)
    log_1mp = jnp.maximum(jnp.log(1.0 - p), -100.0)
    bce = -(t * log_p + (1.0 - t) * log_1mp)
    hi = (c >= 1.0).astype(jnp.float32)
    lo = 1.0 - hi
    n_hi, n_lo = jnp.sum(hi), jnp.sum(lo)
    hi_loss = jnp.where(n_hi > 0, jnp.sum(bce * hi) / jnp.maximum(n_hi, 1.0), 0.0)
    lo_loss = jnp.where(n_lo > 0, jnp.sum(bce * lo) / jnp.maximum(n_lo, 1.0), 0.0)
    return 0.1 * hi_loss + lo_loss


if __name__ == "__main__":
    key = jax.random.PRNGKey(0)
    k1, k2, k3, k4 = jax.random.split(key, 4)

    # Case 1: small single-tile batch, float32 embeddings.
    B, D = 8, 32
    o1 = jax.random.normal(k1, (B, D), dtype=jnp.float32)
    o2 = jax.random.normal(k2, (B, D), dtype=jnp.float32)
    tgt = jax.random.bernoulli(k3, 0.5, (B,)).astype(jnp.float32)
    conf = jax.random.uniform(k4, (B,), minval=0.5, maxval=1.5, dtype=jnp.float32)

    loss = approximated_contrastive_ce_loss(o1, o2, tgt, conf)
    jax.block_until_ready(loss)
    ref = _reference_loss(o1, o2, tgt, conf)
    assert jnp.allclose(loss, ref, rtol=1e-5, atol=1e-5), (loss, ref)

    # Case 2: multi-tile grid with a ragged last tile, bf16 embeddings
    # (native-dtype DMA, cast in kernel; 16-row packing-aligned tiles).
    B2, D2 = 20, 64
    o1b = jax.random.normal(k1, (B2, D2), dtype=jnp.float32).astype(jnp.bfloat16)
    o2b = jax.random.normal(k2, (B2, D2), dtype=jnp.float32).astype(jnp.bfloat16)
    tgt2 = jax.random.bernoulli(k3, 0.5, (B2,)).astype(jnp.float32)
    conf2 = jax.random.uniform(k4, (B2,), minval=0.5, maxval=1.5, dtype=jnp.float32)

    loss2 = approximated_contrastive_ce_loss(o1b, o2b, tgt2, conf2, max_rows=16)
    jax.block_until_ready(loss2)
    ref2 = _reference_loss(o1b, o2b, tgt2, conf2)
    assert jnp.allclose(loss2, ref2, rtol=1e-4, atol=1e-4), (loss2, ref2)

    # Case 3: many tiles -> exercises the inner-axis accumulator, the ragged
    # last tile, and (on v7x) the padded per-core tile path.
    B3, D3 = 50, 32
    o1c = jax.random.normal(k1, (B3, D3), dtype=jnp.float32)
    o2c = jax.random.normal(k2, (B3, D3), dtype=jnp.float32)
    tgt3 = jax.random.bernoulli(k3, 0.5, (B3,)).astype(jnp.float32)
    conf3 = jax.random.uniform(k4, (B3,), minval=0.5, maxval=1.5, dtype=jnp.float32)

    loss3 = approximated_contrastive_ce_loss(o1c, o2c, tgt3, conf3, max_rows=8)
    jax.block_until_ready(loss3)
    ref3 = _reference_loss(o1c, o2c, tgt3, conf3)
    assert jnp.allclose(loss3, ref3, rtol=1e-5, atol=1e-5), (loss3, ref3)

    print("KERNEL_OK")
</pallas_src>

<mosaic_0001>
module attributes {stable_mosaic.version = 11 : i64} {
  func.func @_acce_kernel(%arg0: i32, %arg1: i32, %arg2: memref<8x32xf32, #tpu.memory_space<vmem>>, %arg3: memref<8x32xf32, #tpu.memory_space<vmem>>, %arg4: memref<8x1xf32, #tpu.memory_space<vmem>>, %arg5: memref<8x1xf32, #tpu.memory_space<vmem>>, %arg6: memref<1x8x128xf32, #tpu.memory_space<vmem>>, %arg7: memref<8x128xf32, #tpu.memory_space<vmem>>) attributes {dimension_semantics = [#tpu.dimension_semantics<parallel>, #tpu.dimension_semantics<arbitrary>], iteration_bounds = array<i64: 1, 1>, scalar_prefetch = 0 : i64, scratch_operands = 1 : i64, tpu.core_type = #tpu.core_type<tc>, window_params = [{transform_indices = @transform_0, window_bounds = array<i64: 8, 32>}, {transform_indices = @transform_1, window_bounds = array<i64: 8, 32>}, {transform_indices = @transform_2, window_bounds = array<i64: 8, 1>}, {transform_indices = @transform_3, window_bounds = array<i64: 8, 1>}, {transform_indices = @transform_4, window_bounds = array<i64: 1, 8, 128>}]} {
    %c1_i32 = arith.constant 1 : i32
    %0 = arith.muli %arg0, %c1_i32 : i32
    %1 = arith.addi %0, %arg1 : i32
    %c0_i32 = arith.constant 0 : i32
    %2 = arith.cmpi eq, %arg1, %c0_i32 : i32
    %3 = arith.extui %2 : i1 to i32
    %c0_i32_0 = arith.constant 0 : i32
    %4 = arith.cmpi ne, %3, %c0_i32_0 : i32
    scf.if %4 {
      %cst_23 = arith.constant 0.000000e+00 : f32
      %48 = vector.broadcast %cst_23 : f32 to vector<8x128xf32>
      %c0_24 = arith.constant 0 : index
      %c0_25 = arith.constant 0 : index
      %49 = vector.load %arg7[%c0_24, %c0_25] : memref<8x128xf32, #tpu.memory_space<vmem>>, vector<8x128xf32>
      tpu.vector_store %arg7[%c0_24, %c0_25], %48 {strides = array<i32>} : memref<8x128xf32, #tpu.memory_space<vmem>>, vector<8x128xf32>,
    } else {
    }
    %c0 = arith.constant 0 : index
    %c0_1 = arith.constant 0 : index
    %5 = vector.load %arg2[%c0, %c0_1] : memref<8x32xf32, #tpu.memory_space<vmem>>, vector<8x32xf32>
    %c0_2 = arith.constant 0 : index
    %c0_3 = arith.constant 0 : index
    %6 = vector.load %arg3[%c0_2, %c0_3] : memref<8x32xf32, #tpu.memory_space<vmem>>, vector<8x32xf32>
    %7 = arith.subf %5, %6 : vector<8x32xf32>
    %cst = arith.constant 9.99999997E-7 : f32
    %8 = vector.broadcast %cst : f32 to vector<8x32xf32>
    %9 = arith.addf %7, %8 : vector<8x32xf32>
    %10 = arith.mulf %9, %9 : vector<8x32xf32>
    %cst_4 = arith.constant dense<0.000000e+00> : vector<8xf32>
    %11 = vector.multi_reduction <add>, %10, %cst_4 [1] : vector<8x32xf32> to vector<8xf32>
    %12 = vector.shape_cast %11 : vector<8xf32> to vector<8x1xf32>
    %cst_5 = arith.constant 0.000000e+00 : f32
    %13 = vector.broadcast %cst_5 : f32 to vector<8x1xf32>
    %14 = arith.subf %13, %12 : vector<8x1xf32>
    %15 = math.exp %14 : vector<8x1xf32>
    %c0_6 = arith.constant 0 : index
    %c0_7 = arith.constant 0 : index
    %16 = vector.load %arg4[%c0_6, %c0_7] : memref<8x1xf32, #tpu.memory_space<vmem>>, vector<8x1xf32>
    %c0_8 = arith.constant 0 : index
    %c0_9 = arith.constant 0 : index
    %17 = vector.load %arg5[%c0_8, %c0_9] : memref<8x1xf32, #tpu.memory_space<vmem>>, vector<8x1xf32>
    %cst_10 = arith.constant 0.000000e+00 : f32
    %18 = vector.broadcast %cst_10 : f32 to vector<8x1xf32>
    %19 = arith.subf %18, %12 : vector<8x1xf32>
    %cst_11 = arith.constant -1.000000e+02 : f32
    %20 = vector.broadcast %cst_11 : f32 to vector<8x1xf32>
    %21 = arith.maximumf %19, %20 : vector<8x1xf32>
    %cst_12 = arith.constant 1.000000e+00 : f32
    %22 = vector.broadcast %cst_12 : f32 to vector<8x1xf32>
    %23 = arith.subf %22, %15 : vector<8x1xf32>
    %24 = math.log %23 : vector<8x1xf32>
    %cst_13 = arith.constant -1.000000e+02 : f32
    %25 = vector.broadcast %cst_13 : f32 to vector<8x1xf32>
    %26 = arith.maximumf %24, %25 : vector<8x1xf32>
    %27 = arith.mulf %16, %21 : vector<8x1xf32>
    %cst_14 = arith.constant 1.000000e+00 : f32
    %28 = vector.broadcast %cst_14 : f32 to vector<8x1xf32>
    %29 = arith.subf %28, %16 : vector<8x1xf32>
    %30 = arith.mulf %29, %26 : vector<8x1xf32>
    %31 = arith.addf %27, %30 : vector<8x1xf32>
    %cst_15 = arith.constant 0.000000e+00 : f32
    %32 = vector.broadcast %cst_15 : f32 to vector<8x1xf32>
    %33 = arith.subf %32, %31 : vector<8x1xf32>
    %cst_16 = arith.constant 1.000000e+00 : f32
    %34 = vector.broadcast %cst_16 : f32 to vector<8x1xf32>
    %35 = arith.cmpf oge, %17, %34 : vector<8x1xf32>
    %36 = arith.extui %35 : vector<8x1xi1> to vector<8x1xi32>
    %37 = arith.sitofp %36 : vector<8x1xi32> to vector<8x1xf32>
    %38 = arith.mulf %33, %37 : vector<8x1xf32>
    %c1_i32_17 = arith.constant 1 : i32
    %39 = arith.cmpi slt, %1, %c1_i32_17 : i32
    %40 = arith.extui %39 : i1 to i32
    %c0_i32_18 = arith.constant 0 : i32
    %41 = arith.cmpi ne, %40, %c0_i32_18 : i32
    scf.if %41 {
      %48 = vector.shape_cast %38 : vector<8x1xf32> to vector<1x8x1xf32>
      %cst_23 = arith.constant dense<0.000000e+00> : vector<1xf32>
      %49 = vector.multi_reduction <add>, %48, %cst_23 [1, 2] : vector<1x8x1xf32> to vector<1xf32>
      %50 = vector.shape_cast %49 : vector<1xf32> to vector<1x1x1xf32>
      %51 = vector.extract %50[0, 0, 0] : f32 from vector<1x1x1xf32>
      %52 = vector.shape_cast %33 : vector<8x1xf32> to vector<1x8x1xf32>
      %cst_24 = arith.constant dense<0.000000e+00> : vector<1xf32>
      %53 = vector.multi_reduction <add>, %52, %cst_24 [1, 2] : vector<1x8x1xf32> to vector<1xf32>
      %54 = vector.shape_cast %53 : vector<1xf32> to vector<1x1x1xf32>
      %55 = vector.extract %54[0, 0, 0] : f32 from vector<1x1x1xf32>
      %56 = vector.shape_cast %37 : vector<8x1xf32> to vector<1x8x1xf32>
      %cst_25 = arith.constant dense<0.000000e+00> : vector<1xf32>
      %57 = vector.multi_reduction <add>, %56, %cst_25 [1, 2] : vector<1x8x1xf32> to vector<1xf32>
      %58 = vector.shape_cast %57 : vector<1xf32> to vector<1x1x1xf32>
      %59 = vector.extract %58[0, 0, 0] : f32 from vector<1x1x1xf32>
      %60 = tpu.iota {dimensions = array<i32: 0>} : vector<8x128xi32>
      %c0_i32_26 = arith.constant 0 : i32
      %61 = vector.broadcast %c0_i32_26 : i32 to vector<8x128xi32>
      %62 = arith.cmpi eq, %60, %61 : vector<8x128xi32>
      %c1_i32_27 = arith.constant 1 : i32
      %63 = vector.broadcast %c1_i32_27 : i32 to vector<8x128xi32>
      %64 = arith.cmpi eq, %60, %63 : vector<8x128xi32>
      %c2_i32 = arith.constant 2 : i32
      %65 = vector.broadcast %c2_i32 : i32 to vector<8x128xi32>
      %66 = arith.cmpi eq, %60, %65 : vector<8x128xi32>
      %c3_i32 = arith.constant 3 : i32
      %67 = vector.broadcast %c3_i32 : i32 to vector<8x128xi32>
      %68 = arith.cmpi eq, %60, %67 : vector<8x128xi32>
      %cst_28 = arith.constant 8.000000e+00 : f32
      %cst_29 = arith.constant 0.000000e+00 : f32
      %69 = vector.broadcast %cst_28 : f32 to vector<8x128xf32>
      %70 = vector.broadcast %cst_29 : f32 to vector<8x128xf32>
      %71 = arith.select %68, %69, %70 : vector<8x128xi1>, vector<8x128xf32>
      %72 = vector.broadcast %59 : f32 to vector<8x128xf32>
      %73 = arith.select %66, %72, %71 : vector<8x128xi1>, vector<8x128xf32>
      %74 = vector.broadcast %55 : f32 to vector<8x128xf32>
      %75 = arith.select %64, %74, %73 : vector<8x128xi1>, vector<8x128xf32>
      %76 = vector.broadcast %51 : f32 to vector<8x128xf32>
      %77 = arith.select %62, %76, %75 : vector<8x128xi1>, vector<8x128xf32>
      %c0_30 = arith.constant 0 : index
      %c0_31 = arith.constant 0 : index
      %78 = vector.load %arg7[%c0_30, %c0_31] : memref<8x128xf32, #tpu.memory_space<vmem>>, vector<8x128xf32>
      %79 = arith.addf %78, %77 : vector<8x128xf32>
      %c0_32 = arith.constant 0 : index
      %c0_33 = arith.constant 0 : index
      %80 = vector.load %arg7[%c0_32, %c0_33] : memref<8x128xf32, #tpu.memory_space<vmem>>, vector<8x128xf32>
      tpu.vector_store %arg7[%c0_32, %c0_33], %79 {strides = array<i32>} : memref<8x128xf32, #tpu.memory_space<vmem>>, vector<8x128xf32>,
    } else {
    }
    %c1_i32_19 = arith.constant 1 : i32
    %42 = arith.cmpi sge, %1, %c1_i32_19 : i32
    %43 = arith.extui %42 : i1 to i32
    %c0_i32_20 = arith.constant 0 : i32
    %44 = arith.cmpi ne, %43, %c0_i32_20 : i32
    scf.if %44 {
      %c8_i32 = arith.constant 8 : i32
      %48 = arith.muli %1, %c8_i32 : i32
      %49 = tpu.iota {dimensions = array<i32: 0>} : vector<8x1xi32>
      %50 = vector.broadcast %48 : i32 to vector<8x1xi32>
      %51 = arith.addi %50, %49 : vector<8x1xi32>
      %c8_i32_23 = arith.constant 8 : i32
      %52 = vector.broadcast %c8_i32_23 : i32 to vector<8x1xi32>
      %53 = arith.cmpi slt, %51, %52 : vector<8x1xi32>
      %54 = arith.extui %53 : vector<8x1xi1> to vector<8x1xi32>
      %55 = arith.sitofp %54 : vector<8x1xi32> to vector<8x1xf32>
      %56 = arith.mulf %38, %55 : vector<8x1xf32>
      %57 = vector.shape_cast %56 : vector<8x1xf32> to vector<1x8x1xf32>
      %cst_24 = arith.constant dense<0.000000e+00> : vector<1xf32>
      %58 = vector.multi_reduction <add>, %57, %cst_24 [1, 2] : vector<1x8x1xf32> to vector<1xf32>
      %59 = vector.shape_cast %58 : vector<1xf32> to vector<1x1x1xf32>
      %60 = vector.extract %59[0, 0, 0] : f32 from vector<1x1x1xf32>
      %61 = arith.mulf %33, %55 : vector<8x1xf32>
      %62 = vector.shape_cast %61 : vector<8x1xf32> to vector<1x8x1xf32>
      %cst_25 = arith.constant dense<0.000000e+00> : vector<1xf32>
      %63 = vector.multi_reduction <add>, %62, %cst_25 [1, 2] : vector<1x8x1xf32> to vector<1xf32>
      %64 = vector.shape_cast %63 : vector<1xf32> to vector<1x1x1xf32>
      %65 = vector.extract %64[0, 0, 0] : f32 from vector<1x1x1xf32>
      %66 = arith.mulf %37, %55 : vector<8x1xf32>
      %67 = vector.shape_cast %66 : vector<8x1xf32> to vector<1x8x1xf32>
      %cst_26 = arith.constant dense<0.000000e+00> : vector<1xf32>
      %68 = vector.multi_reduction <add>, %67, %cst_26 [1, 2] : vector<1x8x1xf32> to vector<1xf32>
      %69 = vector.shape_cast %68 : vector<1xf32> to vector<1x1x1xf32>
      %70 = vector.extract %69[0, 0, 0] : f32 from vector<1x1x1xf32>
      %71 = vector.shape_cast %55 : vector<8x1xf32> to vector<1x8x1xf32>
      %cst_27 = arith.constant dense<0.000000e+00> : vector<1xf32>
      %72 = vector.multi_reduction <add>, %71, %cst_27 [1, 2] : vector<1x8x1xf32> to vector<1xf32>
      %73 = vector.shape_cast %72 : vector<1xf32> to vector<1x1x1xf32>
      %74 = vector.extract %73[0, 0, 0] : f32 from vector<1x1x1xf32>
      %75 = tpu.iota {dimensions = array<i32: 0>} : vector<8x128xi32>
      %c0_i32_28 = arith.constant 0 : i32
      %76 = vector.broadcast %c0_i32_28 : i32 to vector<8x128xi32>
      %77 = arith.cmpi eq, %75, %76 : vector<8x128xi32>
      %c1_i32_29 = arith.constant 1 : i32
      %78 = vector.broadcast %c1_i32_29 : i32 to vector<8x128xi32>
      %79 = arith.cmpi eq, %75, %78 : vector<8x128xi32>
      %c2_i32 = arith.constant 2 : i32
      %80 = vector.broadcast %c2_i32 : i32 to vector<8x128xi32>
      %81 = arith.cmpi eq, %75, %80 : vector<8x128xi32>
      %c3_i32 = arith.constant 3 : i32
      %82 = vector.broadcast %c3_i32 : i32 to vector<8x128xi32>
      %83 = arith.cmpi eq, %75, %82 : vector<8x128xi32>
      %cst_30 = arith.constant 0.000000e+00 : f32
      %84 = vector.broadcast %74 : f32 to vector<8x128xf32>
      %85 = vector.broadcast %cst_30 : f32 to vector<8x128xf32>
      %86 = arith.select %83, %84, %85 : vector<8x128xi1>, vector<8x128xf32>
      %87 = vector.broadcast %70 : f32 to vector<8x128xf32>
      %88 = arith.select %81, %87, %86 : vector<8x128xi1>, vector<8x128xf32>
      %89 = vector.broadcast %65 : f32 to vector<8x128xf32>
      %90 = arith.select %79, %89, %88 : vector<8x128xi1>, vector<8x128xf32>
      %91 = vector.broadcast %60 : f32 to vector<8x128xf32>
      %92 = arith.select %77, %91, %90 : vector<8x128xi1>, vector<8x128xf32>
      %c0_31 = arith.constant 0 : index
      %c0_32 = arith.constant 0 : index
      %93 = vector.load %arg7[%c0_31, %c0_32] : memref<8x128xf32, #tpu.memory_space<vmem>>, vector<8x128xf32>
      %94 = arith.addf %93, %92 : vector<8x128xf32>
      %c0_33 = arith.constant 0 : index
      %c0_34 = arith.constant 0 : index
      %95 = vector.load %arg7[%c0_33, %c0_34] : memref<8x128xf32, #tpu.memory_space<vmem>>, vector<8x128xf32>
      tpu.vector_store %arg7[%c0_33, %c0_34], %94 {strides = array<i32>} : memref<8x128xf32, #tpu.memory_space<vmem>>, vector<8x128xf32>,
    } else {
    }
    %c0_i32_21 = arith.constant 0 : i32
    %45 = arith.cmpi eq, %arg1, %c0_i32_21 : i32
    %46 = arith.extui %45 : i1 to i32
    %c0_i32_22 = arith.constant 0 : i32
    %47 = arith.cmpi ne, %46, %c0_i32_22 : i32
    scf.if %47 {
      %c0_23 = arith.constant 0 : index
      %c0_24 = arith.constant 0 : index
      %48 = vector.load %arg7[%c0_23, %c0_24] : memref<8x128xf32, #tpu.memory_space<vmem>>, vector<8x128xf32>
      %c0_25 = arith.constant 0 : index
      %c0_26 = arith.constant 0 : index
      %c0_27 = arith.constant 0 : index
      %49 = vector.load %arg6[%c0_25, %c0_26, %c0_27] : memref<1x8x128xf32, #tpu.memory_space<vmem>>, vector<1x8x128xf32>
      %50 = vector.shape_cast %49 : vector<1x8x128xf32> to vector<8x128xf32>
      %51 = vector.shape_cast %48 : vector<8x128xf32> to vector<1x8x128xf32>
      tpu.vector_store %arg6[%c0_25, %c0_26, %c0_27], %51 {strides = array<i32>} : memref<1x8x128xf32, #tpu.memory_space<vmem>>, vector<1x8x128xf32>,
    } else {
    }
    return
  }
  func.func @transform_0(%arg0: i32, %arg1: i32) -> (i32, i32) {
    %c1_i32 = arith.constant 1 : i32
    %0 = arith.muli %arg0, %c1_i32 : i32
    %1 = arith.addi %0, %arg1 : i32
    %c0_i32 = arith.constant 0 : i32
    %2 = arith.minsi %1, %c0_i32 : i32
    %c0_i32_0 = arith.constant 0 : i32
    %c0_i32_1 = arith.constant 0 : i32
    return %2, %c0_i32_0 : i32, i32
  }
  func.func @transform_1(%arg0: i32, %arg1: i32) -> (i32, i32) {
    %c1_i32 = arith.constant 1 : i32
    %0 = arith.muli %arg0, %c1_i32 : i32
    %1 = arith.addi %0, %arg1 : i32
    %c0_i32 = arith.constant 0 : i32
    %2 = arith.minsi %1, %c0_i32 : i32
    %c0_i32_0 = arith.constant 0 : i32
    %c0_i32_1 = arith.constant 0 : i32
    return %2, %c0_i32_0 : i32, i32
  }
  func.func @transform_2(%arg0: i32, %arg1: i32) -> (i32, i32) {
    %c1_i32 = arith.constant 1 : i32
    %0 = arith.muli %arg0, %c1_i32 : i32
    %1 = arith.addi %0, %arg1 : i32
    %c0_i32 = arith.constant 0 : i32
    %2 = arith.minsi %1, %c0_i32 : i32
    %c0_i32_0 = arith.constant 0 : i32
    %c0_i32_1 = arith.constant 0 : i32
    return %2, %c0_i32_0 : i32, i32
  }
  func.func @transform_3(%arg0: i32, %arg1: i32) -> (i32, i32) {
    %c1_i32 = arith.constant 1 : i32
    %0 = arith.muli %arg0, %c1_i32 : i32
    %1 = arith.addi %0, %arg1 : i32
    %c0_i32 = arith.constant 0 : i32
    %2 = arith.minsi %1, %c0_i32 : i32
    %c0_i32_0 = arith.constant 0 : i32
    %c0_i32_1 = arith.constant 0 : i32
    return %2, %c0_i32_0 : i32, i32
  }
  func.func @transform_4(%arg0: i32, %arg1: i32) -> (i32, i32, i32) {
    %c0_i32 = arith.constant 0 : i32
    %c0_i32_0 = arith.constant 0 : i32
    %c0_i32_1 = arith.constant 0 : i32
    return %arg0, %c0_i32, %c0_i32_0 : i32, i32, i32
  }
}

</mosaic_0001>

<bundles_post_ra>
// kernel: tpu_custom_call.1
= control target key start
LH: loop header
LB: loop body
LE: loop exit
PB: predicated region body
PF: predicated region fallthrough
CT: control target
= control target key end

     0   :  { %s402_s0 = inlined_call_operand.vmem [shape: f32[8,32], index: 0, kind: input, shape index: {}]   ;;  %s403_s1 = inlined_call_operand.vmem [shape: f32[8,32], index: 1, kind: input, shape index: {}]   ;;  %s404_s2 = inlined_call_operand.vmem [shape: f32[8,1], index: 2, kind: input, shape index: {}]   ;;  %s405_s3 = inlined_call_operand.vmem [shape: f32[8,1], index: 3, kind: input, shape index: {}]   ;;  %s406_s4 = inlined_call_operand.hbm [shape: f32[1,8,128], index: 4, kind: output, shape index: {}]  }
   0x1   :  { %v132_v0 = vld [vmem:[%s402_s0] sm:$0xff] }
   0x2   :  { %v133_v1 = vld [vmem:[%s403_s1] sm:$0xff] }
   0x3   :  { %9 = vsyncpa [#allocation4], 0  ;;  %v134_v2 = vsub.f32 %v132_v0, %v133_v1  ;;  %vm137_vm0 = vcmask 261120   ;;  %v144_v12 = vld [vmem:[%s404_s2] sm:$0xff]  ;;  %vm164_vm2 = vcmask 7168   ;;  %v360_v21 = vmov 0.0  }
   0x4   :  { %v152_v15 = vsub.f32 1.0, %v144_v12  ;;  %v145_v16 = vld [vmem:[%s405_s3] sm:$0xff]  ;;  %v195_v49 = vlaneseq  ;;  %s361_s22 = smov [#allocation3]  }
   0x5   :  { %v135_v3 = vadd.f32 1e-06, %v134_v2  ;;  %vm156_vm1 = vcmp.ge.f32.partialorder %v145_v16, 1.0  ;;  %s293_s23 = sshll.u32 %s361_s22, 4  ;;  %s294_s23 = int_to_ptr.vmem [resolvable:$true] %s293_s23 }
   0x6   :  { %v325_v22 = vsel %vm156_vm1, 1.0, %v360_v21  ;;  %v196_v50 = vshrl.u32 %v195_v49, 7  ;;  %s338_s24 = scalar_lea.vmem %s294_s23, 128  ;;  %p343_p1 = scmp.lt.s32.totalorder %s294_s23, %s294_s23 }
   0x7   :  { %v136_v4 = vmul.f32 %v135_v3, %v135_v3  ;;  %v185_v27 = vsel %vm164_vm2, %v325_v22, 0.0  ;;  %p339_p0 = scmp.ne.s32.totalorder %s294_s23, %s338_s24  ;;  %p344_p2 = scmp.lt.s32.totalorder %s338_s24, %s338_s24 }
   0x8   :  { %vm200_vm3 = vcmp.eq.s32.totalorder %v196_v50, 3  ;;  %vm199_vm4 = vcmp.eq.s32.totalorder %v196_v50, 2  ;;  %vm198_vm5 = vcmp.eq.s32.totalorder %v196_v50, 1  ;;  %vm197_vm6 = vcmp.eq.s32.totalorder %v196_v50, 0 }
   0x9   :  { %v138_v5 = vsel %vm137_vm0, %v136_v4, 0.0  ;;  %v201_v51 = vsel %vm200_vm3, 8.0, %v360_v21  ;;  %p345_p3 = por %p344_p2, %p343_p1 }
   0xa   :  { %139 = vadd.xlane.f32.xlu0 %v138_v5 }
   0xb   :  { %p346_p4 = pnand %p345_p3, %p339_p0 }
  0x93   :  { %v140_v6 = vpop.xlane.xlu0 %139 }
  0x94   :  { %v141_v7 = vsub.f32 0.0, %v140_v6 }
  0x96   :  { %v142_v8 = vmul.f32 1.442695, %v141_v7  ;;  %v146_v13 = vmax.f32 %v141_v7, -100.0 }
  0x98   :  { %334 = vpow2.f32 %v142_v8  ;;  %v151_v18 = vmul.f32 %v146_v13, %v144_v12 }
  0xa5   :  { %v335_v9 = vpop.eup %334 }
  0xa6   :  { %v147_v10 = vsub.f32 1.0, %v335_v9 }
  0xa8   :  { %336 = vlog2.f32 %v147_v10 }
  0xb5   :  { %v337_v11 = vpop.eup %336 }
  0xb6   :  { %v149_v14 = vmul.f32 0.6931472, %v337_v11 }
  0xb8   :  { %v150_v17 = vmax.f32 %v149_v14, -100.0 }
  0xba   :  { %v153_v19 = vmul.f32 %v152_v15, %v150_v17 }
  0xbc   :  { %v154_v20 = vadd.f32 %v153_v19, %v151_v18 }
  0xbe   :  { %v155_v23 = vsub.f32 0.0, %v154_v20 }
  0xc0   :  { %v175_v24 = vsel %vm164_vm2, %v155_v23, 0.0  ;;  %v159_v25 = vmul.f32 %v325_v22, %v155_v23 }
  0xc1   :  { %176 = vadd.xlane.f32.xlu1 %v175_v24 }
  0xc2   :  { %v165_v26 = vsel %vm164_vm2, %v159_v25, 0.0 }
  0xc3   :  { %166 = vadd.xlane.f32.xlu0 %v165_v26 }
  0xc5   :  { %186 = vadd.xlane.f32.xlu1 %v185_v27 }
 0x14a   :  { %v177_v28 = vpop.xlane.xlu1 %176 }
 0x14b   :  { %v178_v29 = vrot.slane %v177_v28, 4 }
 0x14c   :  { %v167_v30 = vpop.xlane.xlu0 %166 }
 0x14d   :  { %v179_v31 = vadd.f32 %v178_v29, %v177_v28  ;;  %v168_v32 = vrot.slane %v167_v30, 4 }
 0x14e   :  { %v187_v33 = vpop.xlane.xlu1 %186 }
 0x14f   :  { %v180_v34 = vrot.slane %v179_v31, 2  ;;  %v169_v35 = vadd.f32 %v168_v32, %v167_v30  ;;  %v188_v36 = vrot.slane %v187_v33, 4 }
 0x151   :  { %v170_v37 = vrot.slane %v169_v35, 2  ;;  %v189_v38 = vadd.f32 %v188_v36, %v187_v33  ;;  %v181_v39 = vadd.f32 %v180_v34, %v179_v31 }
 0x153   :  { %v190_v40 = vrot.slane %v189_v38, 2  ;;  %v171_v41 = vadd.f32 %v170_v37, %v169_v35  ;;  %v182_v42 = vrot.slane %v181_v39, 1 }
 0x155   :  { %v191_v43 = vadd.f32 %v190_v40, %v189_v38  ;;  %v172_v44 = vrot.slane %v171_v41, 1  ;;  %v183_v47 = vadd.f32 %v182_v42, %v181_v39 }
 0x157   :  { %v173_v45 = vadd.f32 %v172_v44, %v171_v41  ;;  %v192_v46 = vrot.slane %v191_v43, 1 }
 0x159   :  { %326 = vpush %v173_v45  ;;  %v193_v48 = vadd.f32 %v192_v46, %v191_v43 }
 0x15a   :  { %328 = vpush %v183_v47 }
 0x15b   :  { %330 = vpush %v193_v48 }
 0x18a   :  { %s327_s2 = spop %326 }
 0x18b   :  { %s329_s3 = spop %328  ;;  %v206_v55 = vstv %s327_s2 }
 0x18c   :  { %s331_s21 = spop %330  ;;  %v204_v53 = vstv %s329_s3 }
 0x18d   :  { %v202_v52 = vstv %s331_s21 }
 0x18e   :  { %v203_v54 = vsel %vm199_vm4, %v202_v52, %v201_v51 }
 0x18f   :  { %v205_v56 = vsel %vm198_vm5, %v204_v53, %v203_v54 }
 0x190   :  { %v207_v57 = vsel %vm197_vm6, %v206_v55, %v205_v56 }
 0x191   :  { %286 = vst [vmem:[#allocation3] sm:$0xff] %v207_v57 }
 0x192   :  { %349 = shalt.err (!%p346_p4)
}
 0x193   :  { %296 = dma.vmem_to_hbm [thread:$0]  %s294_s23, 128, %s406_s4, [#allocation4]  }
 0x194   :  { %358 = dma.done.wait [#allocation4], 128  }
 0x195   :  { %359 = vsyncadd [#allocation4], 4294967168 }
 0x196   :  { %300 = vsyncpa [#allocation4], 1 }

</bundles_post_ra>
